<compile_context>
chip_gen: v6e
topology: v6e:2x2x1
jax: 0.10.0
libtpu: 0.0.40
codegen_flags: <defaults>
</compile_context>

<pallas_src>
import math

import jax
import jax.numpy as jnp
from jax import lax
from jax.experimental import pallas as pl
from jax.experimental.pallas import tpu as pltpu


def kl_atten_kernel(x_ref, w_ref, o_ref):
    # x_ref: (tb, N, F)  w_ref: (F, 1)  o_ref: (tb, F)
    x = x_ref[...]            # keep native dtype (bf16 goes straight to the MXU)
    w = w_ref[...]

    # scores on the MXU: (tb, N, F) . (F, 1) -> (tb, N, 1), f32 accumulate.
    s = lax.dot_general(
        x, w, (((2,), (0,)), ((), ())),
        preferred_element_type=jnp.float32)                    # (tb, N, 1)

    # softmax stats over the sequence axis; N stays on the sublane axis.
    m = jnp.max(s, axis=1, keepdims=True)                      # (tb, 1, 1)
    e = jnp.exp(s - m)                                         # (tb, N, 1)
    denom = jnp.sum(e, axis=1, keepdims=True)                  # (tb, 1, 1)

    # Unnormalized pooling on the MXU: contract N, batched over the tile.
    #   h_un[b, 0, f] = sum_n e[b, n, 0] * x[b, n, f]
    h_un = lax.dot_general(
        e.astype(x.dtype), x,
        (((1,), (1,)), ((0,), (0,))),
        preferred_element_type=jnp.float32)                    # (tb, 1, F)

    # Single F-wide scale after the reduction (normalize once, at the end).
    h = h_un * pl.reciprocal(denom, approx=False)              # (tb, 1, F)
    o_ref[...] = h[:, 0, :].astype(o_ref.dtype)


def _pick_batch_tile(B, N, F, itemsize, budget_bytes=4 << 20):
    """Largest divisor of B whose (tb, N, F) input block fits a VMEM budget
    (well under the default scoped VMEM on v5e/v6e/v7x with double-buffering)."""
    per_row = max(1, N * F * itemsize)
    max_tb = max(1, budget_bytes // per_row)
    tb = 1
    for cand in range(1, B + 1):
        if B % cand == 0 and cand <= max_tb:
            tb = cand
    return tb


def kl_atten(x, w):
    B, N, F = x.shape
    assert w.shape == (F, 1)
    itemsize = jnp.dtype(x.dtype).itemsize
    tb = _pick_batch_tile(B, N, F, itemsize)

    cost = pl.CostEstimate(
        flops=4 * B * N * F,                 # scores matmul + pooling matmul
        transcendentals=B * N,               # exp
        bytes_accessed=(B * N * F + B * F + F) * itemsize,
    )

    return pl.pallas_call(
        kl_atten_kernel,
        out_shape=jax.ShapeDtypeStruct((B, F), x.dtype),
        grid_spec=pltpu.PrefetchScalarGridSpec(
            num_scalar_prefetch=0,
            grid=(B // tb,),
            in_specs=[
                pl.BlockSpec((tb, N, F), lambda b: (b, 0, 0)),
                pl.BlockSpec((F, 1), lambda b: (0, 0)),
            ],
            out_specs=pl.BlockSpec((tb, F), lambda b: (b, 0)),
        ),
        compiler_params=pltpu.CompilerParams(
            dimension_semantics=("parallel",)),
        cost_estimate=cost,
    )(x, w)


def kl_atten_ref(x, w):
    scores = jnp.einsum('bnf,fo->bn', x.astype(jnp.float32),
                        w.astype(jnp.float32))
    attn = jax.nn.softmax(scores, axis=1)[..., None]
    return jnp.sum(x.astype(jnp.float32) * attn, axis=1).astype(x.dtype)


if __name__ == "__main__":
    B, N, F = 2, 8, 32   # in_features = 32

    key = jax.random.PRNGKey(0)
    kx, kw = jax.random.split(key)

    x = jax.random.normal(kx, (B, N, F), dtype=jnp.float32)

    # xavier_uniform_(gain=1.414) on a (F, 1) parameter:
    # bound = gain * sqrt(6 / (fan_in + fan_out)) = 1.414 * sqrt(6 / (F + 1))
    bound = 1.414 * math.sqrt(6.0 / (F + 1))
    w = jax.random.uniform(kw, (F, 1), dtype=jnp.float32,
                           minval=-bound, maxval=bound)

    out = kl_atten(x, w)
    jax.block_until_ready(out)

    ref = kl_atten_ref(x, w)
    assert out.shape == (B, F)
    assert jnp.allclose(out, ref, atol=1e-5, rtol=1e-5), "mismatch vs reference"

    print("KERNEL_OK")
</pallas_src>

<mosaic_0001>
module attributes {stable_mosaic.version = 11 : i64} {
  func.func @kl_atten_kernel(%arg0: i32, %arg1: memref<2x8x32xf32, #tpu.memory_space<vmem>>, %arg2: memref<32x1xf32, #tpu.memory_space<vmem>>, %arg3: memref<2x32xf32, #tpu.memory_space<vmem>>) attributes {dimension_semantics = [#tpu.dimension_semantics<parallel>], iteration_bounds = array<i64: 1>, scalar_prefetch = 0 : i64, scratch_operands = 0 : i64, tpu.core_type = #tpu.core_type<tc>, window_params = [{transform_indices = @transform_0, window_bounds = array<i64: 2, 8, 32>}, {pipeline_mode = #tpu.pipeline_mode<synchronous>, transform_indices = @transform_1, window_bounds = array<i64: 32, 1>}, {transform_indices = @transform_2, window_bounds = array<i64: 2, 32>}]} {
    %c0 = arith.constant 0 : index
    %c0_0 = arith.constant 0 : index
    %c0_1 = arith.constant 0 : index
    %0 = vector.load %arg1[%c0, %c0_0, %c0_1] : memref<2x8x32xf32, #tpu.memory_space<vmem>>, vector<2x8x32xf32>
    %c0_2 = arith.constant 0 : index
    %c0_3 = arith.constant 0 : index
    %1 = vector.load %arg2[%c0_2, %c0_3] : memref<32x1xf32, #tpu.memory_space<vmem>>, vector<32x1xf32>
    %cst = arith.constant dense<0.000000e+00> : vector<2x8x1xf32>
    %2 = tpu.matmul %0, %1, %cst {dimension_numbers = #tpu.dot_dimension_numbers<[2], [0], [0, 1], [1], [0, 0, 0, 1, 1, 1], [], []>} : vector<2x8x32xf32>, vector<32x1xf32>, vector<2x8x1xf32> -> vector<2x8x1xf32>
    %cst_4 = arith.constant dense<0xFF800000> : vector<2x1xf32>
    %3 = vector.multi_reduction <maximumf>, %2, %cst_4 [1] : vector<2x8x1xf32> to vector<2x1xf32>
    %4 = vector.shape_cast %3 : vector<2x1xf32> to vector<2x1x1xf32>
    %5 = vector.broadcast %4 : vector<2x1x1xf32> to vector<2x8x1xf32>
    %6 = arith.subf %2, %5 : vector<2x8x1xf32>
    %7 = math.exp %6 : vector<2x8x1xf32>
    %cst_5 = arith.constant dense<0.000000e+00> : vector<2x1xf32>
    %8 = vector.multi_reduction <add>, %7, %cst_5 [1] : vector<2x8x1xf32> to vector<2x1xf32>
    %9 = vector.shape_cast %8 : vector<2x1xf32> to vector<2x1x1xf32>
    %cst_6 = arith.constant dense<0.000000e+00> : vector<2x1x32xf32>
    %10 = tpu.matmul %7, %0, %cst_6 {dimension_numbers = #tpu.dot_dimension_numbers<[1], [1], [2], [2], [0, 0, 0, 2, 1, 2], [0], [0]>} : vector<2x8x1xf32>, vector<2x8x32xf32>, vector<2x1x32xf32> -> vector<2x1x32xf32>
    %11 = tpu.reciprocal %9 : vector<2x1x1xf32> -> vector<2x1x1xf32>
    %12 = vector.broadcast %11 : vector<2x1x1xf32> to vector<2x1x32xf32>
    %13 = arith.mulf %10, %12 : vector<2x1x32xf32>
    %14 = vector.shape_cast %13 : vector<2x1x32xf32> to vector<2x32xf32>
    %c0_7 = arith.constant 0 : index
    %c0_8 = arith.constant 0 : index
    %15 = vector.load %arg3[%c0_7, %c0_8] : memref<2x32xf32, #tpu.memory_space<vmem>>, vector<2x32xf32>
    tpu.vector_store %arg3[%c0_7, %c0_8], %14 {strides = array<i32>} : memref<2x32xf32, #tpu.memory_space<vmem>>, vector<2x32xf32>,
    return
  }
  func.func @transform_0(%arg0: i32) -> (i32, i32, i32) {
    %c0_i32 = arith.constant 0 : i32
    %c0_i32_0 = arith.constant 0 : i32
    %c0_i32_1 = arith.constant 0 : i32
    return %arg0, %c0_i32, %c0_i32_0 : i32, i32, i32
  }
  func.func @transform_1(%arg0: i32) -> (i32, i32) {
    %c0_i32 = arith.constant 0 : i32
    %c0_i32_0 = arith.constant 0 : i32
    %c0_i32_1 = arith.constant 0 : i32
    return %c0_i32, %c0_i32_0 : i32, i32
  }
  func.func @transform_2(%arg0: i32) -> (i32, i32) {
    %c0_i32 = arith.constant 0 : i32
    %c0_i32_0 = arith.constant 0 : i32
    return %arg0, %c0_i32 : i32, i32
  }
}

</mosaic_0001>

<bundles_post_ra>
// kernel: tpu_custom_call.1
= control target key start
LH: loop header
LB: loop body
LE: loop exit
PB: predicated region body
PF: predicated region fallthrough
CT: control target
= control target key end

     0   :  { %vm18_vm0 = vcmask 261120   ;;  %s503_s0 = inlined_call_operand.vmem [shape: f32[2,8,32], index: 0, kind: input, shape index: {}]   ;;  %s504_s1 = inlined_call_operand.vmem [shape: f32[32,1], index: 1, kind: input, shape index: {}]   ;;  %s505_s2 = inlined_call_operand.hbm [shape: f32[2,32], index: 2, kind: output, shape index: {}]  }
   0x1   :  { %v17_v0 = vld [vmem:[%s504_s1 + $0x18] sm:$0xff]  ;;  %v16_v1 = vld [vmem:[%s504_s1 + $0x10] sm:$0xff]  ;;  %v12_v2 = vld [vmem:[%s503_s0] sm:$0xff] }
   0x2   :  { %396 = vmatprep.subr.mxu0 %v17_v0  ;;  %v15_v3 = vld [vmem:[%s504_s1 + $0x8] sm:$0xff]  ;;  %404 = vmatprep.mubr.msk.f32.mxu0 %vm18_vm0, %v12_v2 }
   0x3   :  { %397 = vmatpush3.msra.mxu0 %v17_v0 }
   0x4   :  { %7 = vsyncpa [#allocation3], 0  ;;  %398 = vmatprep.subr.mxu0 %v16_v1  ;;  %v14_v4 = vld [vmem:[%s504_s1] sm:$0xff]  ;;  %v490_v5 = vld [vmem:[%s503_s0 + $0x8] sm:$0xff]  ;;  %v453_v6 = vmov 0   ;;  %v454_v7 = vmov 0.0  }
   0x5   :  { %399 = vmatpush3.msra.mxu0 %v16_v1  ;;  %421 = vset.pattern.permute.xlu1 %v453_v6  ;;  %vm455_vm1 = vmmov 0   ;;  %vm100_vm2 = vcmask 7168   ;;  %vm167_vm3 = vcmask 64512   ;;  %s456_s0 = smov [#allocation2]   ;;  %vm363_vm4 = vcmask 1041409  }
   0x6   :  { %400 = vmatprep.subr.mxu0 %v15_v3  ;;  %407 = vmatprep.subr.mxu1 %v454_v7  ;;  %s374_s1 = sshll.u32 %s456_s0, 4  ;;  %vm366_vm5 = vcmask 254976   ;;  %s375_s1 = int_to_ptr.vmem [resolvable:$true] %s374_s1 }
   0x7   :  { %401 = vmatpush3.msra.mxu0 %v15_v3  ;;  %409 = vmatprep.mubr.msk.f32.mxu1 %vm455_vm1, %v454_v7  ;;  %s431_s21 = scalar_lea.vmem %s375_s1, 32  ;;  %p436_p1 = scmp.lt.s32.totalorder %s375_s1, %s375_s1 }
   0x8   :  { %402 = vmatprep.subr.mxu0 %v14_v4  ;;  %408 = vmatpush3.msra.mxu1 %v12_v2  ;;  %p432_p0 = scmp.ne.s32.totalorder %s375_s1, %s431_s21  ;;  %p437_p2 = scmp.lt.s32.totalorder %s431_s21, %s431_s21 }
   0x9   :  { %403 = vmatpush3.msra.mxu0 %v14_v4  ;;  %412 = vmatprep.subr.mxu1 %v454_v7 }
   0xa   :  { %405 = vmatmul.mubr.msk.f32.vlgmr.msra.gmra.mxu0 %vm18_vm0, %v490_v5  ;;  %p438_p3 = por %p437_p2, %p436_p1 }
   0xc   :  { %p439_p4 = pnand %p438_p3, %p432_p0 }
  0xca   :  { %v406_v8 = vpop.f32.mrf.mxu0 }
  0xcb   :  { %v108_v9 = vsel %vm100_vm2, %v406_v8, -inf }
  0xcc   :  { %v109_v10 = vrot.slane %v108_v9, 4  ;;  %v91_v11 = vpop.f32.mrf.mxu0 }
  0xcd   :  { %v101_v12 = vsel %vm100_vm2, %v91_v11, -inf }
  0xce   :  { %v110_v13 = vmax.f32 %v108_v9, %v109_v10  ;;  %v102_v14 = vrot.slane %v101_v12, 4 }
  0xd0   :  { %v111_v15 = vrot.slane %v110_v13, 2  ;;  %v103_v16 = vmax.f32 %v101_v12, %v102_v14 }
  0xd2   :  { %v112_v17 = vmax.f32 %v110_v13, %v111_v15  ;;  %v104_v18 = vrot.slane %v103_v16, 2 }
  0xd4   :  { %v113_v19 = vrot.slane %v112_v17, 1  ;;  %v105_v20 = vmax.f32 %v103_v16, %v104_v18 }
  0xd6   :  { %v114_v21 = vmax.f32 %v112_v17, %v113_v19  ;;  %v106_v22 = vrot.slane %v105_v20, 1 }
  0xd8   :  { %v116_v23 = vsub.f32 %v406_v8, %v114_v21  ;;  %v107_v24 = vmax.f32 %v105_v20, %v106_v22 }
  0xda   :  { %v119_v25 = vmul.f32 1.442695, %v116_v23  ;;  %v115_v26 = vsub.f32 %v91_v11, %v107_v24 }
  0xdc   :  { %423 = vpow2.f32 %v119_v25  ;;  %v117_v27 = vmul.f32 1.442695, %v115_v26 }
  0xde   :  { %425 = vpow2.f32 %v117_v27 }
  0xe9   :  { %v424_v28 = vpop.eup %423 }
  0xea   :  { %v128_v29 = vsel %vm100_vm2, %v424_v28, 0.0 }
  0xeb   :  { %v426_v30 = vpop.eup %425  ;;  %v129_v31 = vrot.slane %v128_v29, 4 }
  0xec   :  { %v121_v32 = vsel %vm100_vm2, %v426_v30, 0.0  ;;  %135 = vxpose.xlu0.b32.start.end [1/1] (short) (narrow) %v426_v30, 8 }
  0xed   :  { %v130_v33 = vadd.f32 %v129_v31, %v128_v29  ;;  %v122_v34 = vrot.slane %v121_v32, 4 }
  0xef   :  { %v131_v35 = vrot.slane %v130_v33, 2  ;;  %v123_v36 = vadd.f32 %v122_v34, %v121_v32 }
  0xf0   :  { %241 = vxpose.xlu0.b32.start.end [1/1] (short) (narrow) %v424_v28, 8 }
  0xf1   :  { %v132_v37 = vadd.f32 %v131_v35, %v130_v33  ;;  %v124_v38 = vrot.slane %v123_v36, 2 }
  0xf3   :  { %v133_v39 = vrot.slane %v132_v37, 1  ;;  %v125_v40 = vadd.f32 %v124_v38, %v123_v36 }
  0xf5   :  { %v126_v41 = vrot.slane %v125_v40, 1  ;;  %v134_v42 = vadd.f32 %v133_v39, %v132_v37 }
  0xf7   :  { %v127_v43 = vadd.f32 %v126_v41, %v125_v40  ;;  %427 = vrcp.f32 %v134_v42 }
  0xf9   :  { %429 = vrcp.f32 %v127_v43 }
 0x104   :  { %v428_v44 = vpop.eup %427 }
 0x105   :  { %355 = vperm.xlu1 %421, %v428_v44  }
 0x106   :  { %v430_v45 = vpop.eup %429 }
 0x109   :  { %350 = vperm.xlu1 %421, %v430_v45  }
 0x119   :  { %422 = vset.pattern.permute.xlu0 %v453_v6 }
 0x168   :  { %v151_v46 = vpop.trf.xlu0 }
 0x169   :  { %410 = vmatmul.mubr.msk.f32.vlgmr.msra.gmra.mxu1 %vm167_vm3, %v151_v46 }
 0x16a   :  { %413 = vmatpush3.msra.mxu1 %v490_v5  ;;  %414 = vmatprep.mubr.msk.f32.mxu1 %vm455_vm1, %v454_v7 }
 0x16c   :  { %v257_v47 = vpop.trf.xlu0 }
 0x16d   :  { %415 = vmatmul.mubr.msk.f32.vlgmr.msra.gmra.mxu1 %vm167_vm3, %v257_v47 }
 0x180   :  { %v356_v48 = vpop.permute.xlu1 %355 }
 0x184   :  { %v351_v53 = vpop.permute.xlu1 %350 }
 0x229   :  { %v237_v49 = vpop.f32.mrf.mxu1 }
 0x22a   :  { %v358_v55 = vmul.f32 %v351_v53, %v237_v49 }
 0x22b   :  { %v411_v50 = vpop.f32.mrf.mxu1 }
 0x22d   :  { %v342_v51 = vpop.f32.mrf.mxu1 }
 0x22e   :  { %v359_v52 = vmul.f32 %v356_v48, %v342_v51 }
 0x22f   :  { %v416_v54 = vpop.f32.mrf.mxu1 }
 0x230   :  { %v362_v56 = vrot.slane %v359_v52, 7 }
 0x232   :  { %v364_v57 = vsel %vm363_vm4, %v362_v56, %v358_v55 }
 0x233   :  { %367 = vst.msk [vmem:[#allocation2] sm:$0x3] %vm366_vm5, %v364_v57 }
 0x234   :  { %442 = shalt.err (!%p439_p4)
}
 0x235   :  { %377 = dma.vmem_to_hbm [thread:$0]  %s375_s1, 32, %s505_s2, [#allocation3]  }
 0x236   :  { %451 = dma.done.wait [#allocation3], 32  }
 0x237   :  { %452 = vsyncadd [#allocation3], 4294967264 }
 0x238   :  { %381 = vsyncpa [#allocation3], 1 }

</bundles_post_ra>
